<compile_context>
chip_gen: v5e
topology: v5e:2x2
jax: 0.10.0
libtpu: 0.0.40
codegen_flags: <defaults>
</compile_context>

<pallas_src>
import jax
import jax.numpy as jnp
from jax.experimental import pallas as pl
from jax.experimental.pallas import tpu as pltpu


def encoder_kernel(patches_ref, w1_ref, b1_ref, w2_ref, b2_ref, out_ref):
    # patches_ref: (CKK, BB*HW)  lane-dense im2col block (lane dim = BB*HW)
    # w1_ref: (OC, CKK)   b1_ref: (OC, 1)
    # w2_ref: (OC, NC)    b2_ref: (1, NC)
    # out_ref: (BB, NC)
    bb = out_ref.shape[0]
    hw = patches_ref.shape[1] // bb

    w2 = w2_ref[...]
    b2 = b2_ref[...]

    # Conv3x3(pad=1) as ONE matmul over the whole batch block:
    #   (OC, CKK) @ (CKK, BB*HW) -> (OC, BB*HW)
    h = jnp.dot(w1_ref[...], patches_ref[...],
                preferred_element_type=jnp.float32) + b1_ref[...]
    h = jnp.maximum(h, 0.0)                                  # ReLU (VPU)

    rows = []
    for b in range(bb):                                      # small static unroll
        hb = h[:, b * hw:(b + 1) * hw]                       # 128-aligned lane view
        pooled = jnp.mean(hb, axis=-1, keepdims=True)        # (OC, 1) XLU lane reduce
        # Classifier head on VPU/XLU (avoids a degenerate-M MXU matmul):
        #   logits[nc] = sum_oc pooled[oc] * w_fc.T[oc, nc] + b_fc[nc]
        rows.append(jnp.sum(pooled * w2, axis=0, keepdims=True) + b2)   # (1, NC)

    out_ref[...] = jnp.concatenate(rows, axis=0).astype(out_ref.dtype)


def encoder_forward(x_nchw, w_conv, b_conv, w_fc, b_fc, *, block_b=None):
    B, C, H, W = x_nchw.shape
    OC, _, KH, KW = w_conv.shape
    NC = w_fc.shape[0]
    HW = H * W
    CKK = C * KH * KW

    if block_b is None:
        block_b = B if B <= 8 else (8 if B % 8 == 0 else 1)
    assert B % block_b == 0
    # a partial batch block must keep its lane dim 128-aligned
    assert block_b == B or (block_b * HW) % 128 == 0

    # --- glue: im2col (pad=1, stride=1), built directly in lane-dense
    # (CKK, B*HW) layout.  Row ordering is c-major then (kh, kw), matching
    # w_conv.reshape(OC, C*KH*KW). ---
    xp = jnp.pad(x_nchw, ((0, 0), (0, 0), (1, 1), (1, 1)))
    shards = [xp[:, :, kh:kh + H, kw:kw + W] for kh in range(KH) for kw in range(KW)]
    patches = jnp.stack(shards, axis=2)                     # (B, C, KH*KW, H, W)
    patches = patches.reshape(B, CKK, HW)
    patches = patches.transpose(1, 0, 2).reshape(CKK, B * HW).astype(jnp.float32)
    # TODO(synk): at real encoder sizes, move im2col into the kernel (9 shifted
    # static slices of the padded image accumulated as C-contraction matmuls)
    # to cut patch HBM traffic ~9x; kept in the wrapper here because the
    # in-kernel (C,16,16)->(C,256) reshape is not tile-aligned at toy sizes.

    w1 = w_conv.reshape(OC, CKK).astype(jnp.float32)        # (OC, CKK)
    b1 = b_conv.reshape(OC, 1).astype(jnp.float32)          # (OC, 1)
    w2 = w_fc.T.astype(jnp.float32)                         # (OC, NC)
    b2 = b_fc.reshape(1, NC).astype(jnp.float32)            # (1, NC)

    out = pl.pallas_call(
        encoder_kernel,
        out_shape=jax.ShapeDtypeStruct((B, NC), jnp.float32),
        grid=(B // block_b,),
        in_specs=[
            pl.BlockSpec((CKK, block_b * HW), lambda i: (0, i)),
            pl.BlockSpec((OC, CKK), lambda i: (0, 0)),
            pl.BlockSpec((OC, 1), lambda i: (0, 0)),
            pl.BlockSpec((OC, NC), lambda i: (0, 0)),
            pl.BlockSpec((1, NC), lambda i: (0, 0)),
        ],
        out_specs=pl.BlockSpec((block_b, NC), lambda i: (i, 0)),
        compiler_params=pltpu.CompilerParams(
            dimension_semantics=("parallel",)),
    )(patches, w1, b1, w2, b2)
    return out


def reference_forward(x_nchw, w_conv, b_conv, w_fc, b_fc):
    # plain-JAX reference of the same encoder for a sanity check
    y = jax.lax.conv_general_dilated(
        x_nchw, w_conv, window_strides=(1, 1), padding="SAME",
        dimension_numbers=("NCHW", "OIHW", "NCHW"))
    y = y + b_conv.reshape(1, -1, 1, 1)
    y = jnp.maximum(y, 0.0)
    pooled = jnp.mean(y, axis=(2, 3))          # (B, OC)
    return pooled @ w_fc.T + b_fc              # (B, NC)


if __name__ == "__main__":
    # Small shapes consistent with the forward: img_q is an NCHW image batch.
    B, C, H, W = 2, 4, 16, 16
    OC, KH, KW = 16, 3, 3
    NUM_CLASS = 8

    key = jax.random.PRNGKey(0)
    k_x, k_w1, k_b1, k_w2, k_b2 = jax.random.split(key, 5)

    x = jax.random.normal(k_x, (B, C, H, W), dtype=jnp.float32)
    w_conv = jax.random.normal(k_w1, (OC, C, KH, KW), dtype=jnp.float32) * 0.1
    b_conv = jax.random.normal(k_b1, (OC,), dtype=jnp.float32) * 0.1
    w_fc = jax.random.normal(k_w2, (NUM_CLASS, OC), dtype=jnp.float32) * 0.1
    b_fc = jax.random.normal(k_b2, (NUM_CLASS,), dtype=jnp.float32) * 0.1

    out = encoder_forward(x, w_conv, b_conv, w_fc, b_fc)
    out = jax.block_until_ready(out)

    ref = jax.block_until_ready(reference_forward(x, w_conv, b_conv, w_fc, b_fc))
    assert out.shape == (B, NUM_CLASS)
    assert jnp.allclose(out, ref, atol=1e-4, rtol=1e-4)

    print("KERNEL_OK")
</pallas_src>

<mosaic_0001>
module attributes {stable_mosaic.version = 11 : i64} {
  func.func @encoder_kernel(%arg0: i32, %arg1: memref<36x512xf32, #tpu.memory_space<vmem>>, %arg2: memref<16x36xf32, #tpu.memory_space<vmem>>, %arg3: memref<16x1xf32, #tpu.memory_space<vmem>>, %arg4: memref<16x8xf32, #tpu.memory_space<vmem>>, %arg5: memref<1x8xf32, #tpu.memory_space<vmem>>, %arg6: memref<2x8xf32, #tpu.memory_space<vmem>>) attributes {dimension_semantics = [#tpu.dimension_semantics<parallel>], iteration_bounds = array<i64: 1>, scalar_prefetch = 0 : i64, scratch_operands = 0 : i64, tpu.core_type = #tpu.core_type<tc>, window_params = [{transform_indices = @transform_0, window_bounds = array<i64: 36, 512>}, {pipeline_mode = #tpu.pipeline_mode<synchronous>, transform_indices = @transform_1, window_bounds = array<i64: 16, 36>}, {pipeline_mode = #tpu.pipeline_mode<synchronous>, transform_indices = @transform_2, window_bounds = array<i64: 16, 1>}, {pipeline_mode = #tpu.pipeline_mode<synchronous>, transform_indices = @transform_3, window_bounds = array<i64: 16, 8>}, {pipeline_mode = #tpu.pipeline_mode<synchronous>, transform_indices = @transform_4, window_bounds = array<i64: 1, 8>}, {transform_indices = @transform_5, window_bounds = array<i64: 2, 8>}]} {
    %c0 = arith.constant 0 : index
    %c0_0 = arith.constant 0 : index
    %0 = vector.load %arg4[%c0, %c0_0] : memref<16x8xf32, #tpu.memory_space<vmem>>, vector<16x8xf32>
    %c0_1 = arith.constant 0 : index
    %c0_2 = arith.constant 0 : index
    %1 = vector.load %arg5[%c0_1, %c0_2] : memref<1x8xf32, #tpu.memory_space<vmem>>, vector<1x8xf32>
    %c0_3 = arith.constant 0 : index
    %c0_4 = arith.constant 0 : index
    %2 = vector.load %arg2[%c0_3, %c0_4] : memref<16x36xf32, #tpu.memory_space<vmem>>, vector<16x36xf32>
    %c0_5 = arith.constant 0 : index
    %c0_6 = arith.constant 0 : index
    %3 = vector.load %arg1[%c0_5, %c0_6] : memref<36x512xf32, #tpu.memory_space<vmem>>, vector<36x512xf32>
    %cst = arith.constant dense<0.000000e+00> : vector<16x512xf32>
    %4 = tpu.matmul %2, %3, %cst {dimension_numbers = #tpu.dot_dimension_numbers<[1], [0], [0], [1], [0, 0, 1, 1], [], []>} : vector<16x36xf32>, vector<36x512xf32>, vector<16x512xf32> -> vector<16x512xf32>
    %c0_7 = arith.constant 0 : index
    %c0_8 = arith.constant 0 : index
    %5 = vector.load %arg3[%c0_7, %c0_8] : memref<16x1xf32, #tpu.memory_space<vmem>>, vector<16x1xf32>
    %6 = vector.broadcast %5 : vector<16x1xf32> to vector<16x512xf32>
    %7 = arith.addf %4, %6 : vector<16x512xf32>
    %cst_9 = arith.constant 0.000000e+00 : f32
    %8 = vector.broadcast %cst_9 : f32 to vector<16x512xf32>
    %9 = arith.maximumf %7, %8 : vector<16x512xf32>
    %10 = vector.extract_strided_slice %9 {offsets = [0, 0], sizes = [16, 256], strides = [1, 1]} : vector<16x512xf32> to vector<16x256xf32>
    %cst_10 = arith.constant dense<0.000000e+00> : vector<16xf32>
    %11 = vector.multi_reduction <add>, %10, %cst_10 [1] : vector<16x256xf32> to vector<16xf32>
    %12 = vector.shape_cast %11 : vector<16xf32> to vector<16x1xf32>
    %cst_11 = arith.constant 2.560000e+02 : f32
    %13 = vector.broadcast %cst_11 : f32 to vector<16x1xf32>
    %14 = arith.divf %12, %13 : vector<16x1xf32>
    %15 = vector.broadcast %14 : vector<16x1xf32> to vector<16x8xf32>
    %16 = arith.mulf %15, %0 : vector<16x8xf32>
    %cst_12 = arith.constant dense<0.000000e+00> : vector<8xf32>
    %17 = vector.multi_reduction <add>, %16, %cst_12 [0] : vector<16x8xf32> to vector<8xf32>
    %18 = vector.shape_cast %17 : vector<8xf32> to vector<1x8xf32>
    %19 = arith.addf %18, %1 : vector<1x8xf32>
    %20 = vector.extract_strided_slice %9 {offsets = [0, 256], sizes = [16, 256], strides = [1, 1]} : vector<16x512xf32> to vector<16x256xf32>
    %cst_13 = arith.constant dense<0.000000e+00> : vector<16xf32>
    %21 = vector.multi_reduction <add>, %20, %cst_13 [1] : vector<16x256xf32> to vector<16xf32>
    %22 = vector.shape_cast %21 : vector<16xf32> to vector<16x1xf32>
    %cst_14 = arith.constant 2.560000e+02 : f32
    %23 = vector.broadcast %cst_14 : f32 to vector<16x1xf32>
    %24 = arith.divf %22, %23 : vector<16x1xf32>
    %25 = vector.broadcast %24 : vector<16x1xf32> to vector<16x8xf32>
    %26 = arith.mulf %25, %0 : vector<16x8xf32>
    %cst_15 = arith.constant dense<0.000000e+00> : vector<8xf32>
    %27 = vector.multi_reduction <add>, %26, %cst_15 [0] : vector<16x8xf32> to vector<8xf32>
    %28 = vector.shape_cast %27 : vector<8xf32> to vector<1x8xf32>
    %29 = arith.addf %28, %1 : vector<1x8xf32>
    %30 = tpu.concatenate %19, %29 in 0 : vector<1x8xf32>, vector<1x8xf32> -> vector<2x8xf32>
    %c0_16 = arith.constant 0 : index
    %c0_17 = arith.constant 0 : index
    %31 = vector.load %arg6[%c0_16, %c0_17] : memref<2x8xf32, #tpu.memory_space<vmem>>, vector<2x8xf32>
    tpu.vector_store %arg6[%c0_16, %c0_17], %30 {strides = array<i32>} : memref<2x8xf32, #tpu.memory_space<vmem>>, vector<2x8xf32>,
    return
  }
  func.func @transform_0(%arg0: i32) -> (i32, i32) {
    %c0_i32 = arith.constant 0 : i32
    %c0_i32_0 = arith.constant 0 : i32
    return %c0_i32, %arg0 : i32, i32
  }
  func.func @transform_1(%arg0: i32) -> (i32, i32) {
    %c0_i32 = arith.constant 0 : i32
    %c0_i32_0 = arith.constant 0 : i32
    %c0_i32_1 = arith.constant 0 : i32
    return %c0_i32, %c0_i32_0 : i32, i32
  }
  func.func @transform_2(%arg0: i32) -> (i32, i32) {
    %c0_i32 = arith.constant 0 : i32
    %c0_i32_0 = arith.constant 0 : i32
    %c0_i32_1 = arith.constant 0 : i32
    return %c0_i32, %c0_i32_0 : i32, i32
  }
  func.func @transform_3(%arg0: i32) -> (i32, i32) {
    %c0_i32 = arith.constant 0 : i32
    %c0_i32_0 = arith.constant 0 : i32
    %c0_i32_1 = arith.constant 0 : i32
    return %c0_i32, %c0_i32_0 : i32, i32
  }
  func.func @transform_4(%arg0: i32) -> (i32, i32) {
    %c0_i32 = arith.constant 0 : i32
    %c0_i32_0 = arith.constant 0 : i32
    %c0_i32_1 = arith.constant 0 : i32
    return %c0_i32, %c0_i32_0 : i32, i32
  }
  func.func @transform_5(%arg0: i32) -> (i32, i32) {
    %c0_i32 = arith.constant 0 : i32
    %c0_i32_0 = arith.constant 0 : i32
    return %arg0, %c0_i32 : i32, i32
  }
}

</mosaic_0001>

<bundles_post_ra>
// kernel: tpu_custom_call.1
= control target key start
LH: loop header
LB: loop body
LE: loop exit
PB: predicated region body
PF: predicated region fallthrough
CT: control target
= control target key end

     0   :  { %10 = vsyncpa [#allocation3], 0  ;;  %s410_s0 = inlined_call_operand.hbm [shape: f32[36,512], index: 0, kind: input, shape index: {}]   ;;  %s411_s1 = inlined_call_operand.vmem [shape: f32[16,36], index: 1, kind: input, shape index: {}]   ;;  %s412_s2 = inlined_call_operand.vmem [shape: f32[16,1], index: 2, kind: input, shape index: {}]   ;;  %s413_s3 = inlined_call_operand.vmem [shape: f32[16,8], index: 3, kind: input, shape index: {}]   ;;  %s414_s4 = inlined_call_operand.vmem [shape: f32[1,8], index: 4, kind: input, shape index: {}]   ;;  %s415_s5 = inlined_call_operand.hbm [shape: f32[2,8], index: 5, kind: output, shape index: {}]  }
   0x1   :  { %11 = vsyncpa [#allocation4], 0  ;;  %s16_s20 = sshll.u32 %s410_s0, 4  ;;  %s339_s21 = smov [#allocation2]   ;;  %s17_s20 = int_to_ptr.hbm [resolvable:$true] %s16_s20 }
   0x2   :  { %s18_s22 = sshll.u32 %s339_s21, 4  ;;  %s340_s23 = smov 512   ;;  %s19_s22 = int_to_ptr.vmem [resolvable:$true] %s18_s22 }
   0x3   :  { %s341_s24 = smov 32  }
   0x4   :  { %24 = dma.hbm_to_vmem [thread:$0]  %s17_s20, 2560, %s19_s22, [#allocation3], %s340_s23, %s340_s23, %s341_s24  }
   0x5   :  { %335 = dma.done.wait [#allocation3], 2560  }
   0x6   :  { %336 = vsyncadd [#allocation3], 4294964736  ;;  %v342_v0 = vmov 0   ;;  %vm81_vm0 = vcmask 1043456   ;;  %v58_v1 = vld [vmem:[#allocation2 + $0x80] sm:$0xf] }
   0x7   :  { %284 = vset.pattern.permute.xlu0 %v342_v0  ;;  %v59_v2 = vld [vmem:[#allocation2 + $0x88] sm:$0xf]  ;;  %v60_v3 = vld [vmem:[#allocation2 + $0x90] sm:$0xf]  ;;  %266 = vmatpush.msk.msra.mxu0 %vm81_vm0, %v58_v1  ;;  %v61_v4 = vld [vmem:[#allocation2 + $0x98] sm:$0xf] }
   0x8   :  { %269 = vmatpush.msk.msra.mxu1 %vm81_vm0, %v59_v2  ;;  %v54_v5 = vld [vmem:[#allocation2 + $0x60] sm:$0xff]  ;;  %v55_v6 = vld [vmem:[#allocation2 + $0x68] sm:$0xff]  ;;  %272 = vmatpush.msk.msra.mxu2 %vm81_vm0, %v60_v3  ;;  %v56_v7 = vld [vmem:[#allocation2 + $0x70] sm:$0xff]  ;;  %vm74_vm1 = vcmask 293888   ;;  %v343_v55 = vmov 256.0   ;;  %vm211_vm3 = vcmask 64512  }
   0x9   :  { %275 = vmatpush.msk.msra.mxu3 %vm81_vm0, %v61_v4  ;;  %v57_v8 = vld [vmem:[#allocation2 + $0x78] sm:$0xff]  ;;  %v50_v9 = vld [vmem:[#allocation2 + $0x40] sm:$0xff]  ;;  %106 = vmatpush.msra.mxu0 %v54_v5  ;;  %v51_v10 = vld [vmem:[#allocation2 + $0x48] sm:$0xff]  ;;  %285 = vrcp.f32 %v343_v55  ;;  %s344_s10 = smov [#allocation5]   ;;  %s256_s14 = sshll.u32 %s415_s5, 4  ;;  %vm245_vm4 = vcmask 1040384   ;;  %s257_s14 = int_to_ptr.hbm [resolvable:$true] %s256_s14 }
   0xa   :  { %129 = vmatpush.msra.mxu1 %v55_v6  ;;  %v52_v11 = vld [vmem:[#allocation2 + $0x50] sm:$0xff]  ;;  %v53_v12 = vld [vmem:[#allocation2 + $0x58] sm:$0xff]  ;;  %152 = vmatpush.msra.mxu2 %v56_v7  ;;  %v46_v13 = vld [vmem:[#allocation2 + $0x20] sm:$0xff]  ;;  %s254_s11 = sshll.u32 %s344_s10, 4  ;;  %vm247_vm5 = vcmask 58368   ;;  %s255_s11 = int_to_ptr.vmem [resolvable:$true] %s254_s11 }
   0xb   :  { %175 = vmatpush.msra.mxu3 %v57_v8  ;;  %v47_v14 = vld [vmem:[#allocation2 + $0x28] sm:$0xff]  ;;  %107 = vmatpush.msra.mxu0 %v50_v9  ;;  %v48_v15 = vld [vmem:[#allocation2 + $0x30] sm:$0xff]  ;;  %v49_v16 = vld [vmem:[#allocation2 + $0x38] sm:$0xff] }
   0xc   :  { %130 = vmatpush.msra.mxu1 %v51_v10  ;;  %153 = vmatpush.msra.mxu2 %v52_v11  ;;  %v42_v17 = vld [vmem:[#allocation2] sm:$0xff]  ;;  %v43_v18 = vld [vmem:[#allocation2 + $0x8] sm:$0xff]  ;;  %v44_v19 = vld [vmem:[#allocation2 + $0x10] sm:$0xff] }
   0xd   :  { %176 = vmatpush.msra.mxu3 %v53_v12  ;;  %108 = vmatpush.msra.mxu0 %v46_v13  ;;  %v45_v20 = vld [vmem:[#allocation2 + $0x18] sm:$0xff]  ;;  %v40_v21 = vld [vmem:[%s411_s1] sm:$0xff]  ;;  %v41_v23 = vld [vmem:[%s411_s1 + $0x8] sm:$0xff] }
   0xe   :  { %131 = vmatpush.msra.mxu1 %v47_v14  ;;  %154 = vmatpush.msra.mxu2 %v48_v15  ;;  %v62_v22 = vld [vmem:[%s412_s2] sm:$0xff]  ;;  %v63_v24 = vld [vmem:[%s412_s2 + $0x8] sm:$0xff] }
   0xf   :  { %177 = vmatpush.msra.mxu3 %v49_v16  ;;  %109 = vmatpush.msra.mxu0 %v42_v17  ;;  %v286_v56 = vpop.eup %285  ;;  %v37_v0 = vld [vmem:[%s413_s3] sm:$0xff]  ;;  %v38_v3 = vld [vmem:[%s413_s3 + $0x8] sm:$0xff] }
  0x10   :  { %132 = vmatpush.msra.mxu1 %v43_v18  ;;  %155 = vmatpush.msra.mxu2 %v44_v19  ;;  %v201_v57 = vmul.f32 256.0, %v286_v56  ;;  %vm205_vm2 = vweird.f32 %v286_v56 }
  0x11   :  { %178 = vmatpush.msra.mxu3 %v45_v20  ;;  %267 = vmatmul.msk.f32.vlgmr.msra.gmra.mxu0 %vm74_vm1, %v40_v21 }
  0x12   :  { %270 = vmatmul.msk.f32.vlgmr.msra.gmra.mxu1 %vm74_vm1, %v40_v21  ;;  %273 = vmatmul.msk.f32.vlgmr.msra.gmra.mxu2 %vm74_vm1, %v40_v21  ;;  %v202_v58 = vsub.f32 1.0, %v201_v57 }
  0x13   :  { %276 = vmatmul.msk.f32.vlgmr.msra.gmra.mxu3 %vm74_vm1, %v40_v21  ;;  %66 = vperm.xlu0 %284, %v62_v22  }
  0x14   :  { %v203_v59 = vmul.f32 %v286_v56, %v202_v58 }
  0x16   :  { %v204_v60 = vadd.f32 %v286_v56, %v203_v59 }
  0x18   :  { %v206_v62 = vsel %vm205_vm2, %v286_v56, %v204_v60 }
  0x19   :  { %268 = vmatmul.msk.f32.gmra.mxu0 %vm74_vm1, %v41_v23 }
  0x1a   :  { %271 = vmatmul.msk.f32.gmra.mxu1 %vm74_vm1, %v41_v23  ;;  %274 = vmatmul.msk.f32.gmra.mxu2 %vm74_vm1, %v41_v23 }
  0x1b   :  { %277 = vmatmul.msk.f32.gmra.mxu3 %vm74_vm1, %v41_v23  ;;  %71 = vperm.xlu0 %284, %v63_v24  }
  0x85   :  { %v67_v25 = vpop.permute.xlu0 %66 }
  0x8d   :  { %v72_v33 = vpop.permute.xlu0 %71 }
  0x8e   :  { %v111_v26 = vpop.f32.mrf.mxu0 }
  0x8f   :  { %v134_v27 = vpop.f32.mrf.mxu1  ;;  %v112_v28 = vadd.f32 %v111_v26, %v67_v25 }
  0x90   :  { %v135_v29 = vadd.f32 %v134_v27, %v67_v25 }
  0x91   :  { %v186_v30 = vmax.f32 %v112_v28, 0.0 }
  0x92   :  { %v187_v31 = vmax.f32 %v135_v29, 0.0 }
  0x94   :  { %v194_v32 = vadd.f32 %v187_v31, %v186_v30  ;;  %v39_v30 = vld [vmem:[%s414_s4] sm:$0x1] }
  0x95   :  { %v157_v34 = vpop.f32.mrf.mxu2 }
  0x96   :  { %v180_v35 = vpop.f32.mrf.mxu3  ;;  %195 = vadd.xlane.f32.xlu2 %v194_v32  ;;  %v158_v36 = vadd.f32 %v157_v34, %v67_v25  ;;  %v114_v38 = vpop.f32.mrf.mxu0 }
  0x97   :  { %v181_v37 = vadd.f32 %v180_v35, %v67_v25  ;;  %v137_v39 = vpop.f32.mrf.mxu1  ;;  %v115_v40 = vadd.f32 %v114_v38, %v72_v33 }
  0x98   :  { %v138_v41 = vadd.f32 %v137_v39, %v72_v33  ;;  %v188_v42 = vmax.f32 %v158_v36, 0.0 }
  0x99   :  { %v189_v43 = vmax.f32 %v181_v37, 0.0  ;;  %v190_v44 = vmax.f32 %v115_v40, 0.0 }
  0x9a   :  { %v191_v45 = vmax.f32 %v138_v41, 0.0 }
  0x9b   :  { %v222_v46 = vadd.f32 %v189_v43, %v188_v42 }
  0x9c   :  { %v197_v47 = vadd.f32 %v191_v45, %v190_v44 }
  0x9d   :  { %223 = vadd.xlane.f32.xlu1 %v222_v46  ;;  %v160_v48 = vpop.f32.mrf.mxu2 }
  0x9e   :  { %v183_v49 = vpop.f32.mrf.mxu3  ;;  %198 = vadd.xlane.f32.xlu2 %v197_v47  ;;  %v161_v50 = vadd.f32 %v160_v48, %v72_v33 }
  0x9f   :  { %v184_v51 = vadd.f32 %v183_v49, %v72_v33 }
  0xa0   :  { %v192_v52 = vmax.f32 %v161_v50, 0.0 }
  0xa1   :  { %v193_v53 = vmax.f32 %v184_v51, 0.0 }
  0xa3   :  { %v225_v54 = vadd.f32 %v193_v53, %v192_v52 }
  0xa5   :  { %226 = vadd.xlane.f32.xlu1 %v225_v54 }
 0x109   :  { %v196_v61 = vpop.xlane.xlu2 %195 }
 0x10a   :  { %v207_v63 = vmul.f32 %v206_v62, %v196_v61 }
 0x10c   :  { %v209_v4 = vmul.f32 %v207_v63, %v37_v0 }
 0x10e   :  { %v212_v8 = vsel %vm211_vm3, %v209_v4, 0.0 }
 0x110   :  { %v224_v1 = vpop.xlane.xlu1 %223 }
 0x111   :  { %v199_v2 = vpop.xlane.xlu2 %198  ;;  %v228_v7 = vmul.f32 %v224_v1, %v206_v62 }
 0x112   :  { %v208_v5 = vmul.f32 %v206_v62, %v199_v2 }
 0x113   :  { %v230_v12 = vmul.f32 %v228_v7, %v37_v0 }
 0x114   :  { %v210_v6 = vmul.f32 %v208_v5, %v38_v3 }
 0x115   :  { %v232_v17 = vsel %vm211_vm3, %v230_v12, 0.0 }
 0x116   :  { %v213_v9 = vsel %vm211_vm3, %v210_v6, 0.0 }
 0x117   :  { %v214_v10 = vadd.f32 %v213_v9, %v212_v8 }
 0x118   :  { %v227_v11 = vpop.xlane.xlu1 %226 }
 0x119   :  { %v215_v13 = vrot.slane %v214_v10, 4  ;;  %v229_v14 = vmul.f32 %v227_v11, %v206_v62 }
 0x11b   :  { %v216_v15 = vadd.f32 %v215_v13, %v214_v10  ;;  %v231_v16 = vmul.f32 %v229_v14, %v38_v3 }
 0x11d   :  { %v233_v18 = vsel %vm211_vm3, %v231_v16, 0.0  ;;  %v217_v19 = vrot.slane %v216_v15, 2 }
 0x11e   :  { %v234_v20 = vadd.f32 %v233_v18, %v232_v17 }
 0x11f   :  { %v218_v22 = vadd.f32 %v217_v19, %v216_v15 }
 0x120   :  { %v235_v21 = vrot.slane %v234_v20, 4 }
 0x121   :  { %v219_v25 = vrot.slane %v218_v22, 1 }
 0x122   :  { %v236_v23 = vadd.f32 %v235_v21, %v234_v20 }
 0x123   :  { %v220_v28 = vadd.f32 %v219_v25, %v218_v22 }
 0x124   :  { %v237_v24 = vrot.slane %v236_v23, 2 }
 0x125   :  { %v221_v32 = vadd.f32 %v220_v28, %v39_v30 }
 0x126   :  { %v238_v26 = vadd.f32 %v237_v24, %v236_v23 }
 0x128   :  { %v239_v27 = vrot.slane %v238_v26, 1 }
 0x12a   :  { %v240_v29 = vadd.f32 %v239_v27, %v238_v26 }
 0x12c   :  { %v241_v31 = vadd.f32 %v240_v29, %v39_v30 }
 0x12e   :  { %v243_v33 = vrot.slane %v241_v31, 7 }
 0x130   :  { %v246_v34 = vsel %vm245_vm4, %v221_v32, %v243_v33 }
 0x131   :  { %248 = vst.msk [vmem:[#allocation5] sm:$0x3] %vm247_vm5, %v246_v34 }
 0x132   :  { %259 = dma.vmem_to_hbm [thread:$0]  %s255_s11, 32, %s257_s14, [#allocation4]  }
 0x133   :  { %337 = dma.done.wait [#allocation4], 32  }
 0x134   :  { %338 = vsyncadd [#allocation4], 4294967264 }
 0x135   :  { %264 = vsyncpa [#allocation3], 1 }
 0x136   :  { %265 = vsyncpa [#allocation4], 1 }

</bundles_post_ra>
